<compile_context>
chip_gen: v7x
topology: tpu7x:2x2x1
jax: 0.10.0
libtpu: 0.0.40
codegen_flags: <defaults>
</compile_context>

<pallas_src>
import functools

import jax
import jax.numpy as jnp
from jax.experimental import pallas as pl
from jax.experimental.pallas import tpu as pltpu

H1 = 128
H2 = 64


def _relevance_kernel(q_ref, i_ref, t_ref,
                      w1q_ref, w1i_ref, w1t_ref, b1_ref,
                      w2_ref, b2_ref, w3_ref, b3_ref, o_ref):
    """Fused MLP for one batch tile:

       h1 = relu(q@W1_q + item@W1_i + t*w1_t + b1)   (Dropout == identity in eval)
       h2 = relu(h1@W2 + b2)
       o  = sigmoid(sum(h2 * w3_row, lanes) + b3)    stored as a lane-dense row.
    """
    qb = q_ref[...].astype(jnp.bfloat16)
    ib = i_ref[...].astype(jnp.bfloat16)

    # Layer 1: two aligned K=E MXU dots (f32 accumulation) + rank-1 f32 time term.
    h1 = jnp.dot(qb, w1q_ref[...], preferred_element_type=jnp.float32)
    h1 = h1 + jnp.dot(ib, w1i_ref[...], preferred_element_type=jnp.float32)
    h1 = h1 + t_ref[...] * w1t_ref[...]            # (bb,1)*(1,H1) broadcast, f32 VPU
    h1 = jnp.maximum(h1 + b1_ref[...], 0.0)        # ReLU

    # Layer 2.
    h2 = jnp.dot(h1.astype(jnp.bfloat16), w2_ref[...],
                 preferred_element_type=jnp.float32) + b2_ref[...]
    h2 = jnp.maximum(h2, 0.0)                       # ReLU

    # Layer 3 (out_features = 1): VPU multiply + lane reduction instead of N=1 matmul.
    h3 = jnp.sum(h2 * w3_ref[...], axis=-1)         # (bb,)
    h3 = h3.reshape(1, -1) + b3_ref[...]            # (1, bb) lane-dense row
    o_ref[...] = jax.nn.sigmoid(h3).reshape(o_ref.shape).astype(o_ref.dtype)


def _round_up(x, m):
    return ((x + m - 1) // m) * m


@functools.partial(jax.jit, static_argnames=("block_b",))
def relevance_predictor_forward(query_embedding, item_embedding, time_feature,
                                params, block_b=512):
    """query_embedding, item_embedding: [B, E] f32; time_feature: scalar/[B]/[B,1].

    Returns [B, 1] f32 relevance scores in (0, 1)."""
    w1q, w1i, w1t, b1, w2, b2, w3, b3 = params
    B, E = query_embedding.shape

    # Match (and fix) the PyTorch dim-handling of time_feature; keep it in f32.
    t = jnp.asarray(time_feature, jnp.float32)
    if t.ndim == 0:
        t = jnp.broadcast_to(t, (B, 1))
    elif t.ndim == 1:
        t = t[:, None]

    # Batch tile selection: multiple of 8, no bigger than needed, and for B > 256
    # ensure grid_b >= 2 so both v7x TensorCores get work (harmless on v5e/v6e).
    bb = block_b
    if B > 256:
        bb = min(bb, _round_up(-(-B // 2), 256))
    bb = _round_up(min(bb, _round_up(B, 8)), 8)
    grid_b = pl.cdiv(B, bb)

    def batch_map(i):
        return (i, 0)

    def full_map(i):
        return (0, 0)

    out = pl.pallas_call(
        _relevance_kernel,
        out_shape=jax.ShapeDtypeStruct((grid_b, 1, bb), jnp.float32),
        grid_spec=pltpu.PrefetchScalarGridSpec(
            num_scalar_prefetch=0,
            grid=(grid_b,),
            in_specs=[
                pl.BlockSpec((bb, E), batch_map),     # query tile  (streamed, f32)
                pl.BlockSpec((bb, E), batch_map),     # item tile   (streamed, f32)
                pl.BlockSpec((bb, 1), batch_map),     # time column (streamed, f32)
                pl.BlockSpec((E, H1), full_map),      # W1_q (resident, bf16)
                pl.BlockSpec((E, H1), full_map),      # W1_i (resident, bf16)
                pl.BlockSpec((1, H1), full_map),      # w1_t row (f32)
                pl.BlockSpec((1, H1), full_map),      # b1
                pl.BlockSpec((H1, H2), full_map),     # W2 (bf16)
                pl.BlockSpec((1, H2), full_map),      # b2
                pl.BlockSpec((1, H2), full_map),      # w3 row (f32)
                pl.BlockSpec((1, 1), full_map),       # b3
            ],
            out_specs=pl.BlockSpec((1, 1, bb), lambda i: (i, 0, 0)),
        ),
        compiler_params=pltpu.CompilerParams(
            dimension_semantics=("parallel",)),
    )(query_embedding, item_embedding, t,
      w1q, w1i, w1t, b1, w2, b2, w3, b3)

    # Lane-dense (grid_b, 1, bb) rows -> [B, 1] column (padded tail rows dropped).
    return out.reshape(-1)[:B][:, None]


def init_params(key, embedding_dim=256):
    """PyTorch nn.Linear default init: U(-1/sqrt(fan_in), 1/sqrt(fan_in)) for W and b.

    Layer-1 weight is returned pre-split into its query / item / time row blocks:
    W1_q, W1_i as [E, 128] bf16 and w1_t as [1, 128] f32.  W2 is [128, 64] bf16,
    the final layer a [1, 64] f32 row; biases are f32 [1, out]."""
    E = embedding_dim
    d_in = 2 * E + 1

    def uniform(k, shape, fan_in):
        bound = 1.0 / (fan_in ** 0.5)
        return jax.random.uniform(k, shape, jnp.float32, -bound, bound)

    k = jax.random.split(key, 6)
    w1 = uniform(k[0], (d_in, H1), d_in)
    b1 = uniform(k[1], (1, H1), d_in)
    w2 = uniform(k[2], (H1, H2), H1)
    b2 = uniform(k[3], (1, H2), H1)
    w3 = uniform(k[4], (H2, 1), H2)
    b3 = uniform(k[5], (1, 1), H2)

    w1q = w1[:E].astype(jnp.bfloat16)
    w1i = w1[E:2 * E].astype(jnp.bfloat16)
    w1t = w1[2 * E:]                      # (1, H1) f32 — time row stays full precision
    w3row = w3.T                          # (1, H2) f32
    return (w1q, w1i, w1t, b1, w2.astype(jnp.bfloat16), b2, w3row, b3)


def _reference(q, it, t, params):
    """Plain-JAX f32 reference using the same (bf16-stored) weights."""
    w1q, w1i, w1t, b1, w2, b2, w3, b3 = params
    if t.ndim == 1:
        t = t[:, None]
    h = (q @ w1q.astype(jnp.float32) + it @ w1i.astype(jnp.float32)
         + t * w1t + b1)
    h = jnp.maximum(h, 0.0)
    h = jnp.maximum(h @ w2.astype(jnp.float32) + b2, 0.0)
    return jax.nn.sigmoid(jnp.sum(h * w3, axis=-1, keepdims=True) + b3)


if __name__ == "__main__":
    key = jax.random.PRNGKey(0)
    k_params, k_q, k_i, k_t = jax.random.split(key, 4)

    embedding_dim = 256
    batch = 16

    params = init_params(k_params, embedding_dim)
    q = jax.random.normal(k_q, (batch, embedding_dim), jnp.float32)
    it = jax.random.normal(k_i, (batch, embedding_dim), jnp.float32)
    t = jax.random.uniform(k_t, (batch,), jnp.float32)

    out = relevance_predictor_forward(q, it, t, params)
    out = jax.block_until_ready(out)

    ref = _reference(q, it, t, params)
    assert out.shape == (batch, 1), out.shape
    assert bool(jnp.all((out > 0.0) & (out < 1.0)))
    # bf16 matmul inputs -> looser tolerance than pure f32 (outputs live in (0,1)).
    assert jnp.allclose(out, ref, atol=2e-2, rtol=0.0), "mismatch vs reference"

    print("KERNEL_OK")
</pallas_src>

<mosaic_0001>
module attributes {stable_mosaic.version = 11 : i64} {
  func.func @_relevance_kernel(%arg0: i32, %arg1: memref<16x256xf32, #tpu.memory_space<vmem>>, %arg2: memref<16x256xf32, #tpu.memory_space<vmem>>, %arg3: memref<16x1xf32, #tpu.memory_space<vmem>>, %arg4: memref<256x128xbf16, #tpu.memory_space<vmem>>, %arg5: memref<256x128xbf16, #tpu.memory_space<vmem>>, %arg6: memref<1x128xf32, #tpu.memory_space<vmem>>, %arg7: memref<1x128xf32, #tpu.memory_space<vmem>>, %arg8: memref<128x64xbf16, #tpu.memory_space<vmem>>, %arg9: memref<1x64xf32, #tpu.memory_space<vmem>>, %arg10: memref<1x64xf32, #tpu.memory_space<vmem>>, %arg11: memref<1x1xf32, #tpu.memory_space<vmem>>, %arg12: memref<1x1x16xf32, #tpu.memory_space<vmem>>) attributes {dimension_semantics = [#tpu.dimension_semantics<parallel>], iteration_bounds = array<i64: 1>, scalar_prefetch = 0 : i64, scratch_operands = 0 : i64, tpu.core_type = #tpu.core_type<tc>, window_params = [{transform_indices = @transform_0, window_bounds = array<i64: 16, 256>}, {transform_indices = @transform_1, window_bounds = array<i64: 16, 256>}, {transform_indices = @transform_2, window_bounds = array<i64: 16, 1>}, {pipeline_mode = #tpu.pipeline_mode<synchronous>, transform_indices = @transform_3, window_bounds = array<i64: 256, 128>}, {pipeline_mode = #tpu.pipeline_mode<synchronous>, transform_indices = @transform_4, window_bounds = array<i64: 256, 128>}, {pipeline_mode = #tpu.pipeline_mode<synchronous>, transform_indices = @transform_5, window_bounds = array<i64: 1, 128>}, {pipeline_mode = #tpu.pipeline_mode<synchronous>, transform_indices = @transform_6, window_bounds = array<i64: 1, 128>}, {pipeline_mode = #tpu.pipeline_mode<synchronous>, transform_indices = @transform_7, window_bounds = array<i64: 128, 64>}, {pipeline_mode = #tpu.pipeline_mode<synchronous>, transform_indices = @transform_8, window_bounds = array<i64: 1, 64>}, {pipeline_mode = #tpu.pipeline_mode<synchronous>, transform_indices = @transform_9, window_bounds = array<i64: 1, 64>}, {pipeline_mode = #tpu.pipeline_mode<synchronous>, transform_indices = @transform_10, window_bounds = array<i64: 1, 1>}, {transform_indices = @transform_11, window_bounds = array<i64: 1, 1, 16>}]} {
    %c0 = arith.constant 0 : index
    %c0_0 = arith.constant 0 : index
    %0 = vector.load %arg1[%c0, %c0_0] : memref<16x256xf32, #tpu.memory_space<vmem>>, vector<16x256xf32>
    %1 = arith.truncf %0 : vector<16x256xf32> to vector<16x256xbf16>
    %c0_1 = arith.constant 0 : index
    %c0_2 = arith.constant 0 : index
    %2 = vector.load %arg2[%c0_1, %c0_2] : memref<16x256xf32, #tpu.memory_space<vmem>>, vector<16x256xf32>
    %3 = arith.truncf %2 : vector<16x256xf32> to vector<16x256xbf16>
    %c0_3 = arith.constant 0 : index
    %c0_4 = arith.constant 0 : index
    %4 = vector.load %arg4[%c0_3, %c0_4] : memref<256x128xbf16, #tpu.memory_space<vmem>>, vector<256x128xbf16>
    %cst = arith.constant dense<0.000000e+00> : vector<16x128xf32>
    %5 = tpu.matmul %1, %4, %cst {dimension_numbers = #tpu.dot_dimension_numbers<[1], [0], [0], [1], [0, 0, 1, 1], [], []>} : vector<16x256xbf16>, vector<256x128xbf16>, vector<16x128xf32> -> vector<16x128xf32>
    %c0_5 = arith.constant 0 : index
    %c0_6 = arith.constant 0 : index
    %6 = vector.load %arg5[%c0_5, %c0_6] : memref<256x128xbf16, #tpu.memory_space<vmem>>, vector<256x128xbf16>
    %cst_7 = arith.constant dense<0.000000e+00> : vector<16x128xf32>
    %7 = tpu.matmul %3, %6, %cst_7 {dimension_numbers = #tpu.dot_dimension_numbers<[1], [0], [0], [1], [0, 0, 1, 1], [], []>} : vector<16x256xbf16>, vector<256x128xbf16>, vector<16x128xf32> -> vector<16x128xf32>
    %8 = arith.addf %5, %7 : vector<16x128xf32>
    %c0_8 = arith.constant 0 : index
    %c0_9 = arith.constant 0 : index
    %9 = vector.load %arg3[%c0_8, %c0_9] : memref<16x1xf32, #tpu.memory_space<vmem>>, vector<16x1xf32>
    %c0_10 = arith.constant 0 : index
    %c0_11 = arith.constant 0 : index
    %10 = vector.load %arg6[%c0_10, %c0_11] : memref<1x128xf32, #tpu.memory_space<vmem>>, vector<1x128xf32>
    %11 = vector.broadcast %9 : vector<16x1xf32> to vector<16x128xf32>
    %12 = vector.broadcast %10 : vector<1x128xf32> to vector<16x128xf32>
    %13 = arith.mulf %11, %12 : vector<16x128xf32>
    %14 = arith.addf %8, %13 : vector<16x128xf32>
    %c0_12 = arith.constant 0 : index
    %c0_13 = arith.constant 0 : index
    %15 = vector.load %arg7[%c0_12, %c0_13] : memref<1x128xf32, #tpu.memory_space<vmem>>, vector<1x128xf32>
    %16 = vector.broadcast %15 : vector<1x128xf32> to vector<16x128xf32>
    %17 = arith.addf %14, %16 : vector<16x128xf32>
    %cst_14 = arith.constant 0.000000e+00 : f32
    %18 = vector.broadcast %cst_14 : f32 to vector<16x128xf32>
    %19 = arith.maximumf %17, %18 : vector<16x128xf32>
    %20 = arith.truncf %19 : vector<16x128xf32> to vector<16x128xbf16>
    %c0_15 = arith.constant 0 : index
    %c0_16 = arith.constant 0 : index
    %21 = vector.load %arg8[%c0_15, %c0_16] : memref<128x64xbf16, #tpu.memory_space<vmem>>, vector<128x64xbf16>
    %cst_17 = arith.constant dense<0.000000e+00> : vector<16x64xf32>
    %22 = tpu.matmul %20, %21, %cst_17 {dimension_numbers = #tpu.dot_dimension_numbers<[1], [0], [0], [1], [0, 0, 1, 1], [], []>} : vector<16x128xbf16>, vector<128x64xbf16>, vector<16x64xf32> -> vector<16x64xf32>
    %c0_18 = arith.constant 0 : index
    %c0_19 = arith.constant 0 : index
    %23 = vector.load %arg9[%c0_18, %c0_19] : memref<1x64xf32, #tpu.memory_space<vmem>>, vector<1x64xf32>
    %24 = vector.broadcast %23 : vector<1x64xf32> to vector<16x64xf32>
    %25 = arith.addf %22, %24 : vector<16x64xf32>
    %cst_20 = arith.constant 0.000000e+00 : f32
    %26 = vector.broadcast %cst_20 : f32 to vector<16x64xf32>
    %27 = arith.maximumf %25, %26 : vector<16x64xf32>
    %c0_21 = arith.constant 0 : index
    %c0_22 = arith.constant 0 : index
    %28 = vector.load %arg10[%c0_21, %c0_22] : memref<1x64xf32, #tpu.memory_space<vmem>>, vector<1x64xf32>
    %29 = vector.broadcast %28 : vector<1x64xf32> to vector<16x64xf32>
    %30 = arith.mulf %27, %29 : vector<16x64xf32>
    %cst_23 = arith.constant dense<0.000000e+00> : vector<16xf32>
    %31 = vector.multi_reduction <add>, %30, %cst_23 [1] : vector<16x64xf32> to vector<16xf32>
    %32 = vector.shape_cast %31 : vector<16xf32> to vector<1x16xf32>
    %c0_24 = arith.constant 0 : index
    %c0_25 = arith.constant 0 : index
    %33 = vector.load %arg11[%c0_24, %c0_25] : memref<1x1xf32, #tpu.memory_space<vmem>>, vector<1x1xf32>
    %34 = vector.broadcast %33 : vector<1x1xf32> to vector<1x16xf32>
    %35 = arith.addf %32, %34 : vector<1x16xf32>
    %36 = arith.negf %35 : vector<1x16xf32>
    %37 = math.exp %36 : vector<1x16xf32>
    %cst_26 = arith.constant 1.000000e+00 : f32
    %38 = vector.broadcast %cst_26 : f32 to vector<1x16xf32>
    %39 = arith.addf %38, %37 : vector<1x16xf32>
    %40 = arith.divf %38, %39 : vector<1x16xf32>
    %41 = vector.shape_cast %40 : vector<1x16xf32> to vector<1x1x16xf32>
    %c0_27 = arith.constant 0 : index
    %c0_28 = arith.constant 0 : index
    %c0_29 = arith.constant 0 : index
    %42 = vector.load %arg12[%c0_27, %c0_28, %c0_29] : memref<1x1x16xf32, #tpu.memory_space<vmem>>, vector<1x1x16xf32>
    tpu.vector_store %arg12[%c0_27, %c0_28, %c0_29], %41 {strides = array<i32>} : memref<1x1x16xf32, #tpu.memory_space<vmem>>, vector<1x1x16xf32>,
    return
  }
  func.func @transform_0(%arg0: i32) -> (i32, i32) {
    %c0_i32 = arith.constant 0 : i32
    %c0_i32_0 = arith.constant 0 : i32
    return %arg0, %c0_i32 : i32, i32
  }
  func.func @transform_1(%arg0: i32) -> (i32, i32) {
    %c0_i32 = arith.constant 0 : i32
    %c0_i32_0 = arith.constant 0 : i32
    return %arg0, %c0_i32 : i32, i32
  }
  func.func @transform_2(%arg0: i32) -> (i32, i32) {
    %c0_i32 = arith.constant 0 : i32
    %c0_i32_0 = arith.constant 0 : i32
    return %arg0, %c0_i32 : i32, i32
  }
  func.func @transform_3(%arg0: i32) -> (i32, i32) {
    %c0_i32 = arith.constant 0 : i32
    %c0_i32_0 = arith.constant 0 : i32
    %c0_i32_1 = arith.constant 0 : i32
    return %c0_i32, %c0_i32_0 : i32, i32
  }
  func.func @transform_4(%arg0: i32) -> (i32, i32) {
    %c0_i32 = arith.constant 0 : i32
    %c0_i32_0 = arith.constant 0 : i32
    %c0_i32_1 = arith.constant 0 : i32
    return %c0_i32, %c0_i32_0 : i32, i32
  }
  func.func @transform_5(%arg0: i32) -> (i32, i32) {
    %c0_i32 = arith.constant 0 : i32
    %c0_i32_0 = arith.constant 0 : i32
    %c0_i32_1 = arith.constant 0 : i32
    return %c0_i32, %c0_i32_0 : i32, i32
  }
  func.func @transform_6(%arg0: i32) -> (i32, i32) {
    %c0_i32 = arith.constant 0 : i32
    %c0_i32_0 = arith.constant 0 : i32
    %c0_i32_1 = arith.constant 0 : i32
    return %c0_i32, %c0_i32_0 : i32, i32
  }
  func.func @transform_7(%arg0: i32) -> (i32, i32) {
    %c0_i32 = arith.constant 0 : i32
    %c0_i32_0 = arith.constant 0 : i32
    %c0_i32_1 = arith.constant 0 : i32
    return %c0_i32, %c0_i32_0 : i32, i32
  }
  func.func @transform_8(%arg0: i32) -> (i32, i32) {
    %c0_i32 = arith.constant 0 : i32
    %c0_i32_0 = arith.constant 0 : i32
    %c0_i32_1 = arith.constant 0 : i32
    return %c0_i32, %c0_i32_0 : i32, i32
  }
  func.func @transform_9(%arg0: i32) -> (i32, i32) {
    %c0_i32 = arith.constant 0 : i32
    %c0_i32_0 = arith.constant 0 : i32
    %c0_i32_1 = arith.constant 0 : i32
    return %c0_i32, %c0_i32_0 : i32, i32
  }
  func.func @transform_10(%arg0: i32) -> (i32, i32) {
    %c0_i32 = arith.constant 0 : i32
    %c0_i32_0 = arith.constant 0 : i32
    %c0_i32_1 = arith.constant 0 : i32
    return %c0_i32, %c0_i32_0 : i32, i32
  }
  func.func @transform_11(%arg0: i32) -> (i32, i32, i32) {
    %c0_i32 = arith.constant 0 : i32
    %c0_i32_0 = arith.constant 0 : i32
    %c0_i32_1 = arith.constant 0 : i32
    return %arg0, %c0_i32, %c0_i32_0 : i32, i32, i32
  }
}

</mosaic_0001>

<bundles_post_ra>
// kernel: relevance_predictor_forward.1
= control target key start
LH: loop header
LB: loop body
LE: loop exit
PB: predicated region body
PF: predicated region fallthrough
CT: control target
= control target key end

     0   :  { %s1148_s0 = inlined_call_operand.hbm [shape: f32[16,256], index: 0, kind: input, shape index: {}]   ;;  %s1149_s1 = inlined_call_operand.hbm [shape: f32[16,256], index: 1, kind: input, shape index: {}]   ;;  %s1150_s2 = inlined_call_operand.vmem [shape: f32[16,1], index: 2, kind: input, shape index: {}]   ;;  %s1151_s3 = inlined_call_operand.vmem [shape: bf16[256,128], index: 3, kind: input, shape index: {}]   ;;  %s1152_s4 = inlined_call_operand.hbm [shape: bf16[256,128], index: 4, kind: input, shape index: {}]   ;;  %s1153_s5 = inlined_call_operand.vmem [shape: f32[1,128], index: 5, kind: input, shape index: {}]   ;;  %s1154_s6 = inlined_call_operand.vmem [shape: f32[1,128], index: 6, kind: input, shape index: {}]   ;;  %s1155_s7 = inlined_call_operand.vmem [shape: bf16[128,64], index: 7, kind: input, shape index: {}]   ;;  %s1156_s8 = inlined_call_operand.vmem [shape: f32[1,64], index: 8, kind: input, shape index: {}]   ;;  %s1157_s9 = inlined_call_operand.vmem [shape: f32[1,64], index: 9, kind: input, shape index: {}]   ;;  %s1158_s10 = inlined_call_operand.<no memory space> [shape: f32[1,1], index: 10, kind: input, shape index: {}]   ;;  %s1159_s11 = inlined_call_operand.hbm [shape: f32[1,1,16], index: 11, kind: output, shape index: {}]  }
   0x1   :  { %v16_v0 = vstv %s1158_s10 }
   0x2   :  { %17 = vst [vmem:[#allocation2] sm:$0x1] %v16_v0 }
   0x3   :  { %18 = vsyncpa [#allocation4], 0 }
   0x4   :  { %19 = vsyncpa [#allocation7], 0 }
   0x5   :  { %20 = vsyncpa [#allocation5], 0  ;;  %s929_s19 = smov [#allocation6]   ;;  %s930_s21 = smov [#allocation3]  }
   0x6   :  { %s38_s20 = sshll.u32 %s929_s19, 4  ;;  %s26_s22 = sshll.u32 %s930_s21, 4  ;;  %s39_s20 = int_to_ptr.vmem [resolvable:$true] %s38_s20  ;;  %s1003_s22 = int_to_ptr.vmem [resolvable:$true] %s26_s22 }
   0x7   :  { %s835_s25 = scalar_lea.hbm %s1149_s1, 512 }
   0x8   :  { %p836_p0 = scmp.ne.s32.totalorder %s1149_s1, %s835_s25  ;;  %p839_p1 = scmp.lt.u32.totalorder %s835_s25, %s1149_s1 }
   0xa   :  { %p841_p2 = pnand %p839_p1, %p836_p0 }
   0xc   :  { %844 = shalt.err (!%p841_p2)
}
   0xd   :  { %s845_s29 = scalar_lea.vmem %s39_s20, 512  ;;  %p850_p4 = scmp.lt.s32.totalorder %s39_s20, %s39_s20 }
   0xe   :  { %p846_p3 = scmp.ne.s32.totalorder %s39_s20, %s845_s29  ;;  %p851_p5 = scmp.lt.s32.totalorder %s845_s29, %s845_s29 }
  0x10   :  { %p852_p6 = por %p851_p5, %p850_p4 }
  0x12   :  { %p853_p7 = pnand %p852_p6, %p846_p3 }
  0x14   :  { %856 = shalt.err (!%p853_p7)
}
  0x15   :  { %s931_s30 = smov 256   ;;  %s932_s12 = smov 16  }
  0x16   :  { %44 = dma.hbm_to_vmem [thread:$0]  %s1149_s1, 512, %s39_s20, [#allocation7], %s931_s30, %s931_s30, %s932_s12  }
  0x17   :  { %s857_s17 = scalar_lea.hbm %s1148_s0, 512 }
  0x18   :  { %p858_p8 = scmp.ne.s32.totalorder %s1148_s0, %s857_s17  ;;  %p861_p9 = scmp.lt.u32.totalorder %s857_s17, %s1148_s0 }
  0x1a   :  { %p863_p10 = pnand %p861_p9, %p858_p8 }
  0x1c   :  { %866 = shalt.err (!%p863_p10)
}
  0x1d   :  { %s867_s24 = scalar_lea.vmem %s1003_s22, 512  ;;  %p872_p12 = scmp.lt.s32.totalorder %s1003_s22, %s1003_s22 }
  0x1e   :  { %p868_p11 = scmp.ne.s32.totalorder %s1003_s22, %s867_s24  ;;  %p873_p13 = scmp.lt.s32.totalorder %s867_s24, %s867_s24 }
  0x20   :  { %p874_p0 = por %p873_p13, %p872_p12 }
  0x22   :  { %p875_p1 = pnand %p874_p0, %p868_p11 }
  0x24   :  { %878 = shalt.err (!%p875_p1)
}
  0x25   :  { %32 = dma.hbm_to_vmem [thread:$0]  %s1148_s0, 512, %s1003_s22, [#allocation4], %s931_s30, %s931_s30, %s932_s12  }
  0x26   :  { %s933_s25 = smov [#allocation8]   ;;  %s879_s28 = scalar_lea.hbm %s1152_s4, 2048 }
  0x27   :  { %s54_s26 = sshll.u32 %s933_s25, 4  ;;  %p880_p2 = scmp.ne.s32.totalorder %s1152_s4, %s879_s28  ;;  %s55_s26 = int_to_ptr.vmem [resolvable:$true] %s54_s26 }
  0x28   :  { %p883_p3 = scmp.lt.u32.totalorder %s879_s28, %s1152_s4 }
  0x2a   :  { %p885_p4 = pnand %p883_p3, %p880_p2 }
  0x2c   :  { %888 = shalt.err (!%p885_p4)
}
  0x2d   :  { %s889_s16 = scalar_lea.vmem %s55_s26, 2048  ;;  %p894_p6 = scmp.lt.s32.totalorder %s55_s26, %s55_s26 }
  0x2e   :  { %p890_p5 = scmp.ne.s32.totalorder %s55_s26, %s889_s16  ;;  %p895_p7 = scmp.lt.s32.totalorder %s889_s16, %s889_s16 }
  0x30   :  { %p896_p8 = por %p895_p7, %p894_p6 }
  0x32   :  { %p897_p9 = pnand %p896_p8, %p890_p5 }
  0x34   :  { %900 = shalt.err (!%p897_p9)
}
  0x35   :  { %s934_s0 = smov 64   ;;  %s935_s22 = smov 4  }
  0x36   :  { %60 = dma.hbm_to_vmem [thread:$0]  %s1152_s4, 2048, %s55_s26, [#allocation7], %s934_s0, %s934_s0, %s935_s22  }
  0x37   :  { %923 = dma.done.wait [#allocation4], 512  }
  0x38   :  { %924 = vsyncadd [#allocation4], 4294966784 }
  0x39   :  { %925 = dma.done.wait [#allocation7], 2560  }
  0x3a   :  { %926 = vsyncadd [#allocation7], 4294964736  ;;  %v936_v1 = vmov 0   ;;  %v787_v2 = vld [vmem:[#allocation8 + $0x40] sm:$0xff]   ;;  %v791_v6 = vld [vmem:[#allocation8 + $0x48] sm:$0xff]   ;;  %v937_v41 = vmov 0.0  }
  0x3b   :  { %786 = vset.pattern.permute.xlu0 %v936_v1  ;;  %v788_v3 = vld [vmem:[%s1151_s3 + $0x40] sm:$0xff]   ;;  %702 = vmatprep.subr.bf16.mxu0 %v787_v2  ;;  %v792_v7 = vld [vmem:[%s1151_s3 + $0x48] sm:$0xff]   ;;  %v795_v10 = vld [vmem:[#allocation8 + $0x50] sm:$0xff]   ;;  %vm938_vm0 = vmmov 0   ;;  %vm591_vm1 = vcmask 523264   ;;  %vm635_vm2 = vcmask 130112  }
  0x3c   :  { %v789_v4 = vld [vmem:[#allocation8] sm:$0xff]   ;;  %724 = vmatprep.subr.bf16.mxu1 %v788_v3  ;;  %v793_v8 = vld [vmem:[#allocation8 + $0x8] sm:$0xff]   ;;  %v797_v12 = vld [vmem:[#allocation8 + $0x10] sm:$0xff]   ;;  %vm638_vm3 = vcmask 122880  }
  0x3d   :  { %v790_v5 = vld [vmem:[%s1151_s3] sm:$0xff]   ;;  %703 = vmatpush3.bf16.msra.mxu0 %v789_v4  ;;  %v794_v9 = vld [vmem:[%s1151_s3 + $0x8] sm:$0xff]   ;;  %v796_v11 = vld [vmem:[%s1151_s3 + $0x50] sm:$0xff]  }
  0x3e   :  { %725 = vmatpush3.bf16.msra.mxu1 %v790_v5  ;;  %704 = vmatprep.subr.bf16.mxu0 %v791_v6  ;;  %v798_v13 = vld [vmem:[%s1151_s3 + $0x10] sm:$0xff]   ;;  %v799_v14 = vld [vmem:[#allocation8 + $0x58] sm:$0xff]   ;;  %v803_v18 = vld [vmem:[#allocation8 + $0x60] sm:$0xff]  }
  0x3f   :  { %726 = vmatprep.subr.bf16.mxu1 %v792_v7  ;;  %v800_v15 = vld [vmem:[%s1151_s3 + $0x58] sm:$0xff]   ;;  %v804_v19 = vld [vmem:[%s1151_s3 + $0x60] sm:$0xff]   ;;  %v807_v22 = vld [vmem:[#allocation8 + $0x68] sm:$0xff]  }
  0x40   :  { %v801_v16 = vld [vmem:[#allocation8 + $0x18] sm:$0xff]   ;;  %v805_v20 = vld [vmem:[#allocation8 + $0x20] sm:$0xff]   ;;  %v809_v24 = vld [vmem:[#allocation8 + $0x28] sm:$0xff]  }
  0x41   :  { %705 = vmatpush3.bf16.msra.mxu0 %v793_v8  ;;  %v802_v17 = vld [vmem:[%s1151_s3 + $0x18] sm:$0xff]   ;;  %v806_v21 = vld [vmem:[%s1151_s3 + $0x20] sm:$0xff]   ;;  %v808_v23 = vld [vmem:[%s1151_s3 + $0x68] sm:$0xff]  }
  0x42   :  { %727 = vmatpush3.bf16.msra.mxu1 %v794_v9  ;;  %706 = vmatprep.subr.bf16.mxu0 %v795_v10  ;;  %v810_v25 = vld [vmem:[%s1151_s3 + $0x28] sm:$0xff]   ;;  %v811_v26 = vld [vmem:[#allocation8 + $0x70] sm:$0xff]   ;;  %v815_v30 = vld [vmem:[#allocation8 + $0x78] sm:$0xff]  }
  0x43   :  { %728 = vmatprep.subr.bf16.mxu1 %v796_v11  ;;  %v812_v27 = vld [vmem:[%s1151_s3 + $0x70] sm:$0xff]   ;;  %v816_v31 = vld [vmem:[%s1151_s3 + $0x78] sm:$0xff]   ;;  %v89_v39 = vld [vmem:[#allocation6] sm:$0xff] }
  0x44   :  { %v813_v28 = vld [vmem:[#allocation8 + $0x30] sm:$0xff]   ;;  %v817_v32 = vld [vmem:[#allocation8 + $0x38] sm:$0xff]   ;;  %v90_v34 = vld [vmem:[#allocation6 + $0x8] sm:$0xff] }
  0x45   :  { %707 = vmatpush3.bf16.msra.mxu0 %v797_v12  ;;  %v814_v29 = vld [vmem:[%s1151_s3 + $0x30] sm:$0xff]   ;;  %v818_v33 = vld [vmem:[%s1151_s3 + $0x38] sm:$0xff]   ;;  %v83_v44 = vld [vmem:[#allocation3] sm:$0xff] }
  0x46   :  { %729 = vmatpush3.bf16.msra.mxu1 %v798_v13  ;;  %708 = vmatprep.subr.bf16.mxu0 %v799_v14  ;;  %v92_v35 = vld [vmem:[#allocation6 + $0x18] sm:$0xff]  ;;  %v84_v36 = vld [vmem:[#allocation3 + $0x8] sm:$0xff]  ;;  %v91_v40 = vld [vmem:[#allocation6 + $0x10] sm:$0xff] }
  0x47   :  { %730 = vmatprep.subr.bf16.mxu1 %v800_v15  ;;  %v94_v37 = vpack.c.bf16 %v92_v35, %v90_v34  ;;  %v86_v38 = vld [vmem:[#allocation3 + $0x18] sm:$0xff]  ;;  %v93_v43 = vpack.c.bf16 %v91_v40, %v89_v39  ;;  %v85_v45 = vld [vmem:[#allocation3 + $0x10] sm:$0xff]  ;;  %v434_v48 = vld [vmem:[%s1150_s2 + $0x8] sm:$0xff]  ;;  %v604_v35 = vlaneseq }
  0x48   :  { %v88_v42 = vpack.c.bf16 %v86_v38, %v84_v36  ;;  %v433_v46 = vld [vmem:[%s1150_s2] sm:$0xff]  ;;  %v87_v47 = vpack.c.bf16 %v85_v45, %v83_v44  ;;  %v820_v50 = vld [vmem:[%s1155_s7 + $0x8] sm:$0xff]   ;;  %v821_v52 = vld [vmem:[%s1155_s7 + $0x10] sm:$0xff]  }
  0x49   :  { %709 = vmatpush3.bf16.msra.mxu0 %v801_v16  ;;  %287 = vmatprep.mubr.bf16.mxu0 %v94_v37  ;;  %v819_v49 = vld [vmem:[%s1155_s7] sm:$0xff]   ;;  %v822_v53 = vld [vmem:[%s1155_s7 + $0x18] sm:$0xff]   ;;  %v824_v55 = vld [vmem:[%s1155_s7 + $0x28] sm:$0xff]   ;;  %v605_v36 = vshrl.u32 %v604_v35, 7 }
  0x4a   :  { %731 = vmatpush3.bf16.msra.mxu1 %v802_v17  ;;  %710 = vmatprep.subr.bf16.mxu0 %v803_v18  ;;  %v598_v51 = vld [vmem:[#allocation2] sm:$0x1]  ;;  %v825_v56 = vld [vmem:[%s1155_s7 + $0x30] sm:$0xff]   ;;  %v826_v57 = vld [vmem:[%s1155_s7 + $0x38] sm:$0xff]  }
  0x4b   :  { %732 = vmatprep.subr.bf16.mxu1 %v804_v19  ;;  %438 = vperm.xlu0 %786, %v433_v46   ;;  %v823_v54 = vld [vmem:[%s1155_s7 + $0x20] sm:$0xff]   ;;  %v606_v37 = vsub.s32 0, %v605_v36 }
  0x4c   :  { %424 = vmatprep.mubr.bf16.mxu1 %v88_v42  ;;  %v688_v62 = vld [vmem:[%s1153_s5] ss:$0 sm:$0xff] }
  0x4d   :  { %711 = vmatpush3.bf16.msra.mxu0 %v805_v20  ;;  %v689_v11 = vld [vmem:[%s1154_s6] ss:$0 sm:$0xff] }
  0x4e   :  { %733 = vmatpush3.bf16.msra.mxu1 %v806_v21  ;;  %712 = vmatprep.subr.bf16.mxu0 %v807_v22  ;;  %v690_v21 = vld [vmem:[%s1156_s8] ss:$0 sm:$0xff]  ;;  %s939_s8 = smov [#allocation9]  }
  0x4f   :  { %734 = vmatprep.subr.bf16.mxu1 %v808_v23  ;;  %443 = vperm.xlu0 %786, %v434_v48  }
  0x51   :  { %713 = vmatpush3.bf16.msra.mxu0 %v809_v24 }
  0x52   :  { %735 = vmatpush3.bf16.msra.mxu1 %v810_v25  ;;  %714 = vmatprep.subr.bf16.mxu0 %v811_v26  ;;  %v699_v26 = vld [vmem:[%s1157_s9] ss:$0 sm:$0xff]  ;;  %s646_s9 = sshll.u32 %s939_s8, 4  ;;  %s647_s9 = int_to_ptr.vmem [resolvable:$true] %s646_s9 }
  0x53   :  { %736 = vmatprep.subr.bf16.mxu1 %v812_v27  ;;  %601 = vperm.xlu0 %786, %v598_v51   ;;  %s901_s25 = scalar_lea.vmem %s647_s9, 16  ;;  %s905_s26 = scalar_lea.vmem %s647_s9, 32 }
  0x54   :  { %p902_p10 = scmp.ne.s32.totalorder %s647_s9, %s901_s25  ;;  %p906_p11 = scmp.lt.s32.totalorder %s647_s9, %s647_s9 }
  0x55   :  { %715 = vmatpush3.bf16.msra.mxu0 %v813_v28  ;;  %p907_p12 = scmp.lt.s32.totalorder %s905_s26, %s901_s25 }
  0x56   :  { %737 = vmatpush3.bf16.msra.mxu1 %v814_v29  ;;  %716 = vmatprep.subr.bf16.mxu0 %v815_v30 }
  0x57   :  { %738 = vmatprep.subr.bf16.mxu1 %v816_v31  ;;  %p908_p13 = por %p907_p12, %p906_p11 }
  0x59   :  { %717 = vmatpush3.bf16.msra.mxu0 %v817_v32  ;;  %p909_p0 = pnand %p908_p13, %p902_p10 }
  0x5a   :  { %739 = vmatpush3.bf16.msra.mxu1 %v818_v33  ;;  %755 = vmatprep.subr.bf16.mxu0 %v937_v41 }
  0x5c   :  { %288 = vmatmul.mubr.bf16.vlgmr.msra.gmra.mrb[0].mxu0 %v93_v43 }
  0x5d   :  { %425 = vmatmul.mubr.bf16.vlgmr.msra.gmra.mrb[0].mxu1 %v87_v47  ;;  %756 = vmatpush3.bf16.msra.mxu0 %v819_v49 }
  0x5e   :  { %757 = vmatprep.subr.bf16.mxu0 %v937_v41  ;;  %771 = vmatprep.mubr.msk.bf16.mxu0 %vm938_vm0, %v937_v41 }
  0x61   :  { %758 = vmatpush3.bf16.msra.mxu0 %v820_v50  ;;  %v625_v50 = vand.u32 127, %v604_v35 }
  0x62   :  { %759 = vmatprep.subr.bf16.mxu0 %v937_v41 }
  0x63   :  { %v630_v51 = vadd.s32 4294967288, %v625_v50 }
  0x65   :  { %760 = vmatpush3.bf16.msra.mxu0 %v821_v52  ;;  %v628_v52 = vsub.s32 %v625_v50, %v605_v36 }
  0x66   :  { %761 = vmatprep.subr.bf16.mxu0 %v937_v41 }
  0x69   :  { %762 = vmatpush3.bf16.msra.mxu0 %v822_v53  ;;  %v633_v53 = vsub.s32 %v630_v51, %v605_v36 }
  0x6a   :  { %763 = vmatprep.subr.bf16.mxu0 %v937_v41 }
  0x6d   :  { %764 = vmatpush3.bf16.msra.mxu0 %v823_v54 }
  0x6e   :  { %765 = vmatprep.subr.bf16.mxu0 %v937_v41 }
  0x71   :  { %766 = vmatpush3.bf16.msra.mxu0 %v824_v55 }
  0x72   :  { %767 = vmatprep.subr.bf16.mxu0 %v937_v41 }
  0x75   :  { %768 = vmatpush3.bf16.msra.mxu0 %v825_v56 }
  0x76   :  { %769 = vmatprep.subr.bf16.mxu0 %v937_v41 }
  0x79   :  { %770 = vmatpush3.bf16.msra.mxu0 %v826_v57 }
  0xca   :  { %v439_v58 = vpop.permute.xlu0 %438 }
  0xcb   :  { %v452_v7 = vmul.f32 %v688_v62, %v439_v58 }
  0xce   :  { %v444_v10 = vpop.permute.xlu0 %443 }
  0xcf   :  { %v453_v12 = vmul.f32 %v688_v62, %v444_v10 }
  0xd2   :  { %v602_v38 = vpop.permute.xlu0 %601 }
  0xd3   :  { %v607_v39 = vrot.slane %v602_v38, %v606_v37 }
 0x12f   :  { %v718_v59 = vpop.f32.mrb[0].mxu0 }
 0x130   :  { %v740_v60 = vpop.f32.mrb[0].mxu1  ;;  %v719_v61 = vpop.f32.mrb[1].mxu0 }
 0x131   :  { %v720_v63 = vadd.f32 %v719_v61, %v718_v59  ;;  %v741_v0 = vpop.f32.mrb[1].mxu1  ;;  %v721_v1 = vpop.f32.mrb[2].mxu0 }
 0x132   :  { %v742_v2 = vadd.f32 %v741_v0, %v740_v60  ;;  %v743_v3 = vpop.f32.mrb[2].mxu1  ;;  %v722_v4 = vpop.f32.mrb[3].mxu0 }
 0x133   :  { %v723_v5 = vadd.f32 %v722_v4, %v721_v1  ;;  %v744_v6 = vpop.f32.mrb[3].mxu1 }
 0x134   :  { %v427_v8 = vadd.f32 %v742_v2, %v720_v63  ;;  %v745_v9 = vadd.f32 %v744_v6, %v743_v3 }
 0x136   :  { %v454_v13 = vadd.f32 %v452_v7, %v427_v8  ;;  %v430_v14 = vadd.f32 %v745_v9, %v723_v5 }
 0x138   :  { %v463_v15 = vadd.f32 %v689_v11, %v454_v13  ;;  %v455_v16 = vadd.f32 %v453_v12, %v430_v14 }
 0x13a   :  { %v464_v17 = vadd.f32 %v689_v11, %v455_v16  ;;  %v465_v18 = vmax.f32 %v463_v15, 0.0 }
 0x13c   :  { %v466_v19 = vmax.f32 %v464_v17, 0.0 }
 0x13e   :  { %v467_v20 = vpack.c.bf16 %v466_v19, %v465_v18 }
 0x140   :  { %772 = vmatmul.mubr.bf16.vlgmr.msra.gmra.mrb[4].mxu0 %v467_v20 }
 0x213   :  { %v573_v22 = vpop.f32.mrb[4].mxu0 }
 0x214   :  { %v574_v23 = vadd.f32 %v690_v21, %v573_v22  ;;  %v773_v24 = vpop.f32.mrb[5].mxu0 }
 0x215   :  { %v576_v25 = vpop.f32.mrb[6].mxu0 }
 0x216   :  { %v580_v27 = vmax.f32 %v574_v23, 0.0  ;;  %v577_v28 = vadd.f32 %v690_v21, %v576_v25  ;;  %v774_v29 = vpop.f32.mrb[7].mxu0 }
 0x218   :  { %v581_v30 = vmax.f32 %v577_v28, 0.0  ;;  %v589_v31 = vmul.f32 %v699_v26, %v580_v27 }
 0x21a   :  { %v592_v32 = vsel %vm591_vm1, %v589_v31, 0.0  ;;  %v590_v33 = vmul.f32 %v699_v26, %v581_v30 }
 0x21b   :  { %593 = vadd.xlane.f32.xlu1 %v592_v32 }
 0x21c   :  { %v595_v34 = vsel %vm591_vm1, %v590_v33, 0.0 }
 0x21f   :  { %596 = vadd.xlane.f32.xlu1 %v595_v34 }
 0x2a8   :  { %v594_v40 = vpop.xlane.xlu1 %593 }
 0x2a9   :  { %v608_v41 = vadd.f32 %v607_v39, %v594_v40 }
 0x2ab   :  { %v700_v42 = vmul.f32 -1.442695, %v608_v41 }
 0x2ac   :  { %v597_v43 = vpop.xlane.xlu1 %596 }
 0x2ad   :  { %827 = vpow2.f32 %v700_v42  ;;  %v609_v44 = vadd.f32 %v607_v39, %v597_v43 }
 0x2af   :  { %v701_v45 = vmul.f32 -1.442695, %v609_v44 }
 0x2b1   :  { %829 = vpow2.f32 %v701_v45 }
 0x2b7   :  { %v828_v46 = vpop.eup %827 }
 0x2b8   :  { %v616_v47 = vadd.f32 1.0, %v828_v46 }
 0x2ba   :  { %831 = vrcp.f32 %v616_v47 }
 0x2bb   :  { %v830_v48 = vpop.eup %829 }
 0x2bc   :  { %v617_v49 = vadd.f32 1.0, %v830_v48 }
 0x2be   :  { %833 = vrcp.f32 %v617_v49 }
 0x2c4   :  { %v832_v54 = vpop.eup %831 }
 0x2c5   :  { %v629_v56 = vrot.slane %v832_v54, %v628_v52 }
 0x2c8   :  { %v834_v55 = vpop.eup %833 }
 0x2c9   :  { %v634_v57 = vrot.slane %v834_v55, %v633_v53 }
 0x2cb   :  { %v636_v58 = vsel %vm635_vm2, %v634_v57, %v629_v56 }
 0x2cc   :  { %639 = vst.msk [vmem:[#allocation9] sm:$0x1] %vm638_vm3, %v636_v58 }
 0x2cd   :  { %912 = shalt.err (!%p909_p0)
}
 0x2ce   :  { %s913_s10 = scalar_lea.hbm %s1159_s11, 16 }
 0x2cf   :  { %p914_p1 = scmp.ne.s32.totalorder %s1159_s11, %s913_s10  ;;  %p917_p2 = scmp.lt.u32.totalorder %s913_s10, %s1159_s11 }
 0x2d1   :  { %p919_p3 = pnand %p917_p2, %p914_p1 }
 0x2d3   :  { %922 = shalt.err (!%p919_p3)
}
 0x2d4   :  { %649 = dma.vmem_to_hbm [thread:$0]  %s647_s9, 16, %s1159_s11, [#allocation5]  }
 0x2d5   :  { %927 = dma.done.wait [#allocation5], 16  }
 0x2d6   :  { %928 = vsyncadd [#allocation5], 4294967280 }
 0x2d7   :  { %653 = vsyncpa [#allocation4], 1 }
 0x2d8   :  { %654 = vsyncpa [#allocation7], 1 }
 0x2d9   :  { %655 = vsyncpa [#allocation5], 1 }

</bundles_post_ra>
